<compile_context>
chip_gen: v6e
topology: v6e:2x2x1
jax: 0.10.0
libtpu: 0.0.40
codegen_flags: <defaults>
</compile_context>

<pallas_src>
import functools

import numpy as np

import jax
import jax.numpy as jnp
from jax.experimental import pallas as pl
from jax.experimental.pallas import tpu as pltpu


_NEG_BIG = -10000.0  # sentinel the reference writes into the target slot before the "other" max


def _round_up(x, m):
    return (x + m - 1) // m * m


def _cw_fwd_kernel(targets_ref, logits_ref, psum_ref, active_ref, oidx_ref, *,
                   kappa, batch, block_b):
    """One batch tile of the CW untargeted margin loss.

    targets_ref: VMEM int32 [TB, 1]    attack target class per row
    logits_ref:  VMEM [TB, K]          logits tile in its native dtype (f32 or bf16)
    psum_ref:    VMEM f32 [1, 8, 128]  per-tile partial sum of clamped margins (lane-dense)
    active_ref:  VMEM f32 [TB, 1]      1.0 where margin > 0 (residual for custom_vjp)
    oidx_ref:    VMEM int32 [TB, 1]    argmax index of the non-target ("other") max (residual)
    """
    x = logits_ref[...]                                      # stay in native dtype
    tb, k = x.shape

    col = jax.lax.broadcasted_iota(jnp.int32, (tb, k), 1)    # [TB, K] class index
    is_target = col == targets_ref[...]                      # single lane-broadcast compare

    zero = jnp.zeros((), dtype=x.dtype)
    neg_big = jnp.asarray(_NEG_BIG, dtype=x.dtype)

    # real = target logit (exactly one nonzero per row -> exact even in bf16)
    real = jnp.sum(jnp.where(is_target, x, zero), axis=-1, keepdims=True).astype(jnp.float32)

    # other = max over non-target slots (target slot forced to -1e4, like the reference)
    other_vals = jnp.where(is_target, neg_big, x)             # [TB, K]
    other_nat = jnp.max(other_vals, axis=-1, keepdims=True)   # native dtype
    other = other_nat.astype(jnp.float32)

    # index of the "other" max (residual for the backward); f32 lane-max for robust lowering
    col_f = col.astype(jnp.float32)
    oidx = jnp.max(jnp.where(other_vals == other_nat, col_f, -1.0),
                   axis=-1, keepdims=True).astype(jnp.int32)

    margin_raw = real - other + kappa                         # [TB, 1] f32

    # mask rows of the (possibly padded) last tile that lie past the true batch size
    row = jax.lax.broadcasted_iota(jnp.int32, (tb, 1), 0)
    valid = (pl.program_id(0) * block_b + row) < batch
    margin = jnp.where(valid, jnp.maximum(margin_raw, 0.0), 0.0)

    psum_ref[...] = jnp.full(psum_ref.shape, jnp.sum(margin), dtype=jnp.float32)
    active_ref[...] = jnp.where(valid & (margin_raw > 0.0), 1.0, 0.0).astype(jnp.float32)
    oidx_ref[...] = oidx


def _choose_block_b(batch, num_classes, itemsize):
    """Largest batch tile under a ~20 MiB VMEM budget.

    Accounts for the double-buffered logits tile plus the 128-lane-padded targets/active/oidx
    columns. Leaves headroom under v7x's 32 MiB scoped default (64 MiB physical)."""
    k_pad = _round_up(max(num_classes, 1), 128)
    per_row = 2 * itemsize * k_pad + 3 * 2 * 4 * 128
    tb = (20 * 1024 * 1024) // per_row
    tb = int(max(8, tb))
    if tb >= batch:
        return batch
    return (tb // 8) * 8


def _cw_forward(logits, targets_i32, kappa, block_b=None):
    batch, num_classes = logits.shape
    if block_b is None:
        block_b = _choose_block_b(batch, num_classes, jnp.dtype(logits.dtype).itemsize)
    block_b = int(min(block_b, batch))
    if block_b < batch:
        block_b = max(8, (block_b // 8) * 8)    # sublane-aligned tiles when not taking the full batch
    grid = pl.cdiv(batch, block_b)

    kernel = functools.partial(_cw_fwd_kernel, kappa=float(kappa), batch=batch, block_b=block_b)
    psum, active, oidx = pl.pallas_call(
        kernel,
        grid=(grid,),
        in_specs=[
            pl.BlockSpec((block_b, 1), lambda i: (i, 0)),             # targets column (VMEM)
            pl.BlockSpec((block_b, num_classes), lambda i: (i, 0)),   # logits tile, full K per tile
        ],
        out_specs=(
            pl.BlockSpec((1, 8, 128), lambda i: (i, 0, 0)),           # lane-dense per-tile partial sums
            pl.BlockSpec((block_b, 1), lambda i: (i, 0)),             # active residual
            pl.BlockSpec((block_b, 1), lambda i: (i, 0)),             # other-argmax residual
        ),
        out_shape=(
            jax.ShapeDtypeStruct((grid, 8, 128), jnp.float32),
            jax.ShapeDtypeStruct((batch, 1), jnp.float32),
            jax.ShapeDtypeStruct((batch, 1), jnp.int32),
        ),
        compiler_params=pltpu.CompilerParams(
            dimension_semantics=("parallel",),       # shard batch tiles across TCs (v7x: 2 TCs/chip)
            vmem_limit_bytes=32 * 1024 * 1024,       # raise v5e's 16 MiB scoped default; safe on v7x
        ),
    )(targets_i32.reshape(batch, 1), logits)

    loss = jnp.sum(psum[:, 0, 0]) / batch            # divide by the true B in the wrapper
    return loss, active, oidx


@functools.partial(jax.custom_vjp, nondiff_argnums=(2, 3))
def _cw_loss(logits, targets_i32, kappa, block_b):
    loss, _, _ = _cw_forward(logits, targets_i32, kappa, block_b)
    return loss


def _cw_loss_fwd(logits, targets_i32, kappa, block_b):
    loss, active, oidx = _cw_forward(logits, targets_i32, kappa, block_b)
    shape_token = jnp.zeros((0, logits.shape[1]), dtype=logits.dtype)  # carries (K, dtype), 0 bytes
    return loss, (targets_i32, active, oidx, shape_token)


def _cw_loss_bwd(kappa, block_b, res, g):
    targets_i32, active, oidx, shape_token = res
    batch = targets_i32.shape[0]
    num_classes = shape_token.shape[1]
    # d(loss)/d(logits)[b,k] = (g/B) * active_b * (onehot_target - onehot_other_argmax)
    onehot_t = jax.nn.one_hot(targets_i32, num_classes, dtype=jnp.float32)
    onehot_o = jax.nn.one_hot(oidx[:, 0], num_classes, dtype=jnp.float32)
    grad_logits = ((g / batch) * active * (onehot_t - onehot_o)).astype(shape_token.dtype)
    grad_targets = np.zeros(targets_i32.shape, dtype=jax.dtypes.float0)  # int primal -> float0 cotangent
    return grad_logits, grad_targets


_cw_loss.defvjp(_cw_loss_fwd, _cw_loss_bwd)


def untargeted_logits_adv_loss(logits, targets, kappa=0.0, block_b=None):
    """Forward pass (with custom VJP) of UntargetedLogitsAdvLoss.

    Args:
      logits:  [B, K] float array of network logits.
      targets: [B] (or [B, 1]) integer array of attack target classes.
      kappa:   minimum margin (default 0.0).
      block_b: optional batch-tile override (default: auto-sized to the VMEM budget).
    Returns:
      scalar float32 loss (mean over the batch).
    """
    targets_i32 = targets.astype(jnp.int32).reshape(-1)
    return _cw_loss(logits, targets_i32, float(kappa), block_b)


if __name__ == "__main__":
    def ref_loss(lg, tg, kap):
        b, k = lg.shape
        onehot = jax.nn.one_hot(tg, k, dtype=lg.dtype)
        real = jnp.sum(onehot * lg, axis=1)
        other = jnp.max((1.0 - onehot) * lg - onehot * 10000.0, axis=1)
        return jnp.mean(jnp.maximum(real - other + kap, 0.0))

    key = jax.random.PRNGKey(0)
    k1, k2, k3, k4 = jax.random.split(key, 4)

    # Attack-sized case (single tile): e.g. ModelNet40-style, 8 examples x 40 classes.
    B, K = 8, 40
    logits = jax.random.normal(k1, (B, K), dtype=jnp.float32)
    targets = jax.random.randint(k2, (B,), 0, K, dtype=jnp.int32)

    for kappa in (0.0, 5.0):
        loss = jax.block_until_ready(untargeted_logits_adv_loss(logits, targets, kappa=kappa))
        ref = ref_loss(logits, targets, kappa)
        assert jnp.allclose(loss, ref, atol=1e-5, rtol=1e-5), ("fwd", kappa, loss, ref)

    # Gradient via custom_vjp (backward built from residuals; no re-read of logits).
    g_kernel = jax.grad(lambda lg: untargeted_logits_adv_loss(lg, targets, kappa=5.0))(logits)
    g_ref = jax.grad(lambda lg: ref_loss(lg, targets, 5.0))(logits)
    assert jnp.allclose(g_kernel, g_ref, atol=1e-5, rtol=1e-5), "grad mismatch (single tile)"

    # Tiled path: batch grid with a padded last tile (200 = 3 full tiles of 64 + 8 valid rows).
    B2 = 200
    logits2 = jax.random.normal(k3, (B2, K), dtype=jnp.float32)
    targets2 = jax.random.randint(k4, (B2,), 0, K, dtype=jnp.int32)

    loss2 = jax.block_until_ready(
        untargeted_logits_adv_loss(logits2, targets2, kappa=0.0, block_b=64))
    ref2 = ref_loss(logits2, targets2, 0.0)
    assert jnp.allclose(loss2, ref2, atol=1e-5, rtol=1e-5), ("fwd tiled", loss2, ref2)

    g2_kernel = jax.grad(
        lambda lg: untargeted_logits_adv_loss(lg, targets2, kappa=0.0, block_b=64))(logits2)
    g2_ref = jax.grad(lambda lg: ref_loss(lg, targets2, 0.0))(logits2)
    assert jnp.allclose(g2_kernel, g2_ref, atol=1e-5, rtol=1e-5), "grad mismatch (tiled)"

    print("KERNEL_OK")
</pallas_src>

<mosaic_0001>
module attributes {stable_mosaic.version = 11 : i64} {
  func.func @_cw_fwd_kernel(%arg0: i32, %arg1: memref<8x1xi32, #tpu.memory_space<vmem>>, %arg2: memref<8x40xf32, #tpu.memory_space<vmem>>, %arg3: memref<1x8x128xf32, #tpu.memory_space<vmem>>, %arg4: memref<8x1xf32, #tpu.memory_space<vmem>>, %arg5: memref<8x1xi32, #tpu.memory_space<vmem>>) attributes {dimension_semantics = [#tpu.dimension_semantics<parallel>], iteration_bounds = array<i64: 1>, scalar_prefetch = 0 : i64, scratch_operands = 0 : i64, tpu.core_type = #tpu.core_type<tc>, window_params = [{transform_indices = @transform_0, window_bounds = array<i64: 8, 1>}, {transform_indices = @transform_1, window_bounds = array<i64: 8, 40>}, {transform_indices = @transform_2, window_bounds = array<i64: 1, 8, 128>}, {transform_indices = @transform_3, window_bounds = array<i64: 8, 1>}, {transform_indices = @transform_4, window_bounds = array<i64: 8, 1>}]} {
    %c0 = arith.constant 0 : index
    %c0_0 = arith.constant 0 : index
    %0 = vector.load %arg2[%c0, %c0_0] : memref<8x40xf32, #tpu.memory_space<vmem>>, vector<8x40xf32>
    %1 = tpu.iota {dimensions = array<i32: 1>} : vector<8x40xi32>
    %c0_1 = arith.constant 0 : index
    %c0_2 = arith.constant 0 : index
    %2 = vector.load %arg1[%c0_1, %c0_2] : memref<8x1xi32, #tpu.memory_space<vmem>>, vector<8x1xi32>
    %3 = vector.broadcast %2 : vector<8x1xi32> to vector<8x40xi32>
    %4 = arith.cmpi eq, %1, %3 : vector<8x40xi32>
    %cst = arith.constant 0.000000e+00 : f32
    %5 = vector.broadcast %cst : f32 to vector<8x40xf32>
    %6 = arith.select %4, %0, %5 : vector<8x40xi1>, vector<8x40xf32>
    %cst_3 = arith.constant dense<0.000000e+00> : vector<8xf32>
    %7 = vector.multi_reduction <add>, %6, %cst_3 [1] : vector<8x40xf32> to vector<8xf32>
    %8 = vector.shape_cast %7 : vector<8xf32> to vector<8x1xf32>
    %cst_4 = arith.constant -1.000000e+04 : f32
    %9 = vector.broadcast %cst_4 : f32 to vector<8x40xf32>
    %10 = arith.select %4, %9, %0 : vector<8x40xi1>, vector<8x40xf32>
    %cst_5 = arith.constant dense<0xFF800000> : vector<8xf32>
    %11 = vector.multi_reduction <maximumf>, %10, %cst_5 [1] : vector<8x40xf32> to vector<8xf32>
    %12 = vector.shape_cast %11 : vector<8xf32> to vector<8x1xf32>
    %13 = arith.sitofp %1 : vector<8x40xi32> to vector<8x40xf32>
    %14 = vector.broadcast %12 : vector<8x1xf32> to vector<8x40xf32>
    %15 = arith.cmpf oeq, %10, %14 : vector<8x40xf32>
    %cst_6 = arith.constant -1.000000e+00 : f32
    %16 = vector.broadcast %cst_6 : f32 to vector<8x40xf32>
    %17 = arith.select %15, %13, %16 : vector<8x40xi1>, vector<8x40xf32>
    %cst_7 = arith.constant dense<0xFF800000> : vector<8xf32>
    %18 = vector.multi_reduction <maximumf>, %17, %cst_7 [1] : vector<8x40xf32> to vector<8xf32>
    %19 = vector.shape_cast %18 : vector<8xf32> to vector<8x1xf32>
    %20 = arith.fptosi %19 : vector<8x1xf32> to vector<8x1xi32>
    %21 = arith.subf %8, %12 : vector<8x1xf32>
    %cst_8 = arith.constant 0.000000e+00 : f32
    %22 = vector.broadcast %cst_8 : f32 to vector<8x1xf32>
    %23 = arith.addf %21, %22 : vector<8x1xf32>
    %24 = tpu.iota {dimensions = array<i32: 0>} : vector<8x1xi32>
    %c8_i32 = arith.constant 8 : i32
    %25 = arith.muli %arg0, %c8_i32 : i32
    %26 = vector.broadcast %25 : i32 to vector<8x1xi32>
    %27 = arith.addi %26, %24 : vector<8x1xi32>
    %c8_i32_9 = arith.constant 8 : i32
    %28 = vector.broadcast %c8_i32_9 : i32 to vector<8x1xi32>
    %29 = arith.cmpi slt, %27, %28 : vector<8x1xi32>
    %cst_10 = arith.constant 0.000000e+00 : f32
    %30 = vector.broadcast %cst_10 : f32 to vector<8x1xf32>
    %31 = arith.maximumf %23, %30 : vector<8x1xf32>
    %cst_11 = arith.constant 0.000000e+00 : f32
    %32 = vector.broadcast %cst_11 : f32 to vector<8x1xf32>
    %33 = arith.select %29, %31, %32 : vector<8x1xi1>, vector<8x1xf32>
    %34 = vector.shape_cast %33 : vector<8x1xf32> to vector<1x8x1xf32>
    %cst_12 = arith.constant dense<0.000000e+00> : vector<1xf32>
    %35 = vector.multi_reduction <add>, %34, %cst_12 [1, 2] : vector<1x8x1xf32> to vector<1xf32>
    %36 = vector.shape_cast %35 : vector<1xf32> to vector<1x1x1xf32>
    %37 = vector.extract %36[0, 0, 0] : f32 from vector<1x1x1xf32>
    %38 = vector.broadcast %37 : f32 to vector<1x8x128xf32>
    %c0_13 = arith.constant 0 : index
    %c0_14 = arith.constant 0 : index
    %c0_15 = arith.constant 0 : index
    %39 = vector.load %arg3[%c0_13, %c0_14, %c0_15] : memref<1x8x128xf32, #tpu.memory_space<vmem>>, vector<1x8x128xf32>
    tpu.vector_store %arg3[%c0_13, %c0_14, %c0_15], %38 {strides = array<i32>} : memref<1x8x128xf32, #tpu.memory_space<vmem>>, vector<1x8x128xf32>,
    %cst_16 = arith.constant 0.000000e+00 : f32
    %40 = vector.broadcast %cst_16 : f32 to vector<8x1xf32>
    %41 = arith.cmpf ogt, %23, %40 : vector<8x1xf32>
    %42 = arith.andi %29, %41 : vector<8x1xi1>
    %cst_17 = arith.constant 1.000000e+00 : f32
    %cst_18 = arith.constant 0.000000e+00 : f32
    %43 = vector.broadcast %cst_17 : f32 to vector<8x1xf32>
    %44 = vector.broadcast %cst_18 : f32 to vector<8x1xf32>
    %45 = arith.select %42, %43, %44 : vector<8x1xi1>, vector<8x1xf32>
    %c0_19 = arith.constant 0 : index
    %c0_20 = arith.constant 0 : index
    %46 = vector.load %arg4[%c0_19, %c0_20] : memref<8x1xf32, #tpu.memory_space<vmem>>, vector<8x1xf32>
    tpu.vector_store %arg4[%c0_19, %c0_20], %45 {strides = array<i32>} : memref<8x1xf32, #tpu.memory_space<vmem>>, vector<8x1xf32>,
    %c0_21 = arith.constant 0 : index
    %c0_22 = arith.constant 0 : index
    %47 = vector.load %arg5[%c0_21, %c0_22] : memref<8x1xi32, #tpu.memory_space<vmem>>, vector<8x1xi32>
    tpu.vector_store %arg5[%c0_21, %c0_22], %20 {strides = array<i32>} : memref<8x1xi32, #tpu.memory_space<vmem>>, vector<8x1xi32>,
    return
  }
  func.func @transform_0(%arg0: i32) -> (i32, i32) {
    %c0_i32 = arith.constant 0 : i32
    %c0_i32_0 = arith.constant 0 : i32
    return %arg0, %c0_i32 : i32, i32
  }
  func.func @transform_1(%arg0: i32) -> (i32, i32) {
    %c0_i32 = arith.constant 0 : i32
    %c0_i32_0 = arith.constant 0 : i32
    return %arg0, %c0_i32 : i32, i32
  }
  func.func @transform_2(%arg0: i32) -> (i32, i32, i32) {
    %c0_i32 = arith.constant 0 : i32
    %c0_i32_0 = arith.constant 0 : i32
    %c0_i32_1 = arith.constant 0 : i32
    return %arg0, %c0_i32, %c0_i32_0 : i32, i32, i32
  }
  func.func @transform_3(%arg0: i32) -> (i32, i32) {
    %c0_i32 = arith.constant 0 : i32
    %c0_i32_0 = arith.constant 0 : i32
    return %arg0, %c0_i32 : i32, i32
  }
  func.func @transform_4(%arg0: i32) -> (i32, i32) {
    %c0_i32 = arith.constant 0 : i32
    %c0_i32_0 = arith.constant 0 : i32
    return %arg0, %c0_i32 : i32, i32
  }
}

</mosaic_0001>

<bundles_post_ra>
// kernel: tpu_custom_call.1
= control target key start
LH: loop header
LB: loop body
LE: loop exit
PB: predicated region body
PF: predicated region fallthrough
CT: control target
= control target key end

     0   :  { %s168_s0 = inlined_call_operand.vmem [shape: s32[8,1], index: 0, kind: input, shape index: {}]   ;;  %s169_s1 = inlined_call_operand.vmem [shape: f32[8,40], index: 1, kind: input, shape index: {}]   ;;  %s170_s2 = inlined_call_operand.hbm [shape: f32[1,8,128], index: 2, kind: output, shape index: {0}]   ;;  %s171_s3 = inlined_call_operand.vmem [shape: f32[8,1], index: 3, kind: output, shape index: {1}]   ;;  %s172_s4 = inlined_call_operand.vmem [shape: s32[8,1], index: 4, kind: output, shape index: {2}]  }
   0x1   :  { %v18_v0 = vld [vmem:[%s168_s0] sm:$0xff] }
   0x2   :  { %10 = vsyncpa [#allocation3], 0  ;;  %v119_v1 = vmov 0   ;;  %v16_v2 = vlaneseq  ;;  %v15_v4 = vld [vmem:[%s169_s1] sm:$0xff]  ;;  %vm24_vm0 = vcmask 326656   ;;  %vm49_vm2 = vcmask 7168  }
   0x3   :  { %96 = vset.pattern.permute.xlu0 %v119_v1  ;;  %v120_v15 = vmov 0.0  }
   0x4   :  { %20 = vperm.xlu0 %96, %v18_v0   ;;  %v17_v3 = vand.u32 127, %v16_v2 }
   0x6   :  { %v32_v13 = vcvt.s32.f32 %v17_v3 }
  0x7f   :  { %v21_v5 = vpop.permute.xlu0 %20 }
  0x80   :  { %vm22_vm1 = vcmp.eq.s32.totalorder %v17_v3, %v21_v5 }
  0x81   :  { %v28_v6 = vsel %vm22_vm1, -10000.0, %v15_v4  ;;  %v23_v7 = vsel %vm22_vm1, %v15_v4, 0.0 }
  0x82   :  { %v29_v8 = vsel %vm24_vm0, %v28_v6, -inf  ;;  %v25_v9 = vsel %vm24_vm0, %v23_v7, 0.0 }
  0x83   :  { %30 = vmax.xlane.f32.xlu1 %v29_v8  ;;  %26 = vadd.xlane.f32.xlu0 %v25_v9 }
 0x10c   :  { %v31_v10 = vpop.xlane.xlu1 %30  ;;  %v27_v11 = vpop.xlane.xlu0 %26 }
 0x10d   :  { %v39_v12 = vsub.f32 %v27_v11, %v31_v10  ;;  %vm33_vm3 = vcmp.eq.f32.partialorder %v28_v6, %v31_v10 }
 0x10e   :  { %v34_v18 = vsel %vm33_vm3, %v32_v13, -1.0 }
 0x10f   :  { %vm62_vm4 = vcmp.gt.f32.partialorder %v39_v12, 0.0  ;;  %v47_v14 = vmax.f32 %v39_v12, 0.0  ;;  %v35_v19 = vsel %vm24_vm0, %v34_v18, -inf }
 0x110   :  { %v64_v16 = vsel %vm62_vm4, 1.0, %v120_v15 }
 0x111   :  { %v50_v17 = vsel %vm49_vm2, %v47_v14, 0.0  ;;  %65 = vst.msk [vmem:[%s171_s3] sm:$0xff] %vm49_vm2, %v64_v16  ;;  %s121_s3 = smov [#allocation2]  }
 0x112   :  { %51 = vadd.xlane.f32.xlu1 %v50_v17  ;;  %s73_s21 = sshll.u32 %s121_s3, 4  ;;  %s74_s21 = int_to_ptr.vmem [resolvable:$true] %s73_s21 }
 0x113   :  { %s97_s23 = scalar_lea.vmem %s74_s21, 128  ;;  %p102_p1 = scmp.lt.s32.totalorder %s74_s21, %s74_s21 }
 0x114   :  { %p98_p0 = scmp.ne.s32.totalorder %s74_s21, %s97_s23  ;;  %p103_p2 = scmp.lt.s32.totalorder %s97_s23, %s97_s23 }
 0x116   :  { %36 = vmax.xlane.f32.xlu1 %v35_v19  ;;  %p104_p3 = por %p103_p2, %p102_p1 }
 0x118   :  { %p105_p4 = pnand %p104_p3, %p98_p0 }
 0x19b   :  { %v52_v20 = vpop.xlane.xlu1 %51 }
 0x19c   :  { %v53_v21 = vrot.slane %v52_v20, 4 }
 0x19e   :  { %v54_v22 = vadd.f32 %v53_v21, %v52_v20 }
 0x19f   :  { %v37_v23 = vpop.xlane.xlu1 %36 }
 0x1a0   :  { %v55_v24 = vrot.slane %v54_v22, 2  ;;  %v89_v25 = vtrunc.f32 %v37_v23 }
 0x1a2   :  { %v90_v26 = vcvt.f32.s32 %v89_v25  ;;  %v56_v27 = vadd.f32 %v55_v24, %v54_v22 }
 0x1a4   :  { %66 = vst.msk [vmem:[%s172_s4] sm:$0xff] %vm49_vm2, %v90_v26  ;;  %v57_v28 = vrot.slane %v56_v27, 1 }
 0x1a6   :  { %v58_v29 = vadd.f32 %v57_v28, %v56_v27 }
 0x1a8   :  { %91 = vpush %v58_v29 }
 0x1d9   :  { %s92_s22 = spop %91 }
 0x1da   :  { %v60_v30 = vstv %s92_s22 }
 0x1db   :  { %61 = vst [vmem:[#allocation2] sm:$0xff] %v60_v30 }
 0x1dc   :  { %108 = shalt.err (!%p105_p4)
}
 0x1dd   :  { %76 = dma.vmem_to_hbm [thread:$0]  %s74_s21, 128, %s170_s2, [#allocation3]  }
 0x1de   :  { %117 = dma.done.wait [#allocation3], 128  }
 0x1df   :  { %118 = vsyncadd [#allocation3], 4294967168 }
 0x1e0   :  { %88 = vsyncpa [#allocation3], 1 }

</bundles_post_ra>
